<compile_context>
chip_gen: v6e
topology: v6e:2x2x1
jax: 0.10.0
libtpu: 0.0.40
codegen_flags: <defaults>
</compile_context>

<pallas_src>
import jax
import jax.numpy as jnp
from jax import lax
from jax.experimental import pallas as pl
from jax.experimental.pallas import tpu as pltpu


def _bpr_loss_kernel(rp_ref, rne_ref, o_ref):
    # loss = -log(sigmoid(r_p - r_ne)) == softplus(r_ne - r_p)
    # Stable softplus: max(x, 0) + log1p(exp(-|x|))  -> 2 EUP pushes, no inf/NaN.
    x = rne_ref[...].astype(jnp.float32) - rp_ref[...].astype(jnp.float32)
    sp = jnp.maximum(x, 0.0) + jnp.log1p(jnp.exp(-jnp.abs(x)))
    o_ref[...] = sp.astype(o_ref.dtype)


def _softplus_stable(x):
    """Pure-jnp stable softplus for the (<1024-element) ragged tail."""
    xf = x.astype(jnp.float32)
    return (jnp.maximum(xf, 0.0) + jnp.log1p(jnp.exp(-jnp.abs(xf)))).astype(x.dtype)


def _device_defaults():
    """Per-TPU-generation (max_tile_rows, vmem_limit_bytes, split_for_two_cores)."""
    kind = ""
    try:
        kind = jax.devices()[0].device_kind.lower()
    except Exception:
        pass
    if ("v6" in kind) or ("v7" in kind) or ("7x" in kind):
        # v6e: 1024-row tiles sit just past the knee of the HBM curve and halve
        # per-grid-step overhead (24 MiB double-buffered -> raise scoped VMEM).
        # v7x: 24 MiB still fits 64 MiB physical VMEM; also feed both TCs.
        return 1024, 32 * 1024 * 1024, ("v7" in kind or "7x" in kind)
    # v5e / unknown: 512x1024 f32 (12 MiB double-buffered) stays under the
    # 16 MiB scoped-VMEM default and is already at the bandwidth knee.
    return 512, None, False


def pitf_loss(r_p, r_ne, *, lane_width=1024, max_tile_rows=None):
    """Pallas TPU implementation of PITF_Loss.forward(r_p, r_ne).

    Accepts any matching shape/dtype; returns -log(sigmoid(r_p - r_ne))
    elementwise (computed in the stable softplus form).
    """
    assert r_p.shape == r_ne.shape, "r_p and r_ne must have the same shape"
    assert r_p.dtype == r_ne.dtype, "r_p and r_ne must have the same dtype"
    orig_shape = r_p.shape
    dtype = r_p.dtype
    n = int(r_p.size)
    if n == 0:
        return jnp.zeros(orig_shape, dtype)

    tile_rows_default, vmem_limit_bytes, split_for_cores = _device_defaults()
    if max_tile_rows is None:
        max_tile_rows = tile_rows_default

    W = lane_width                         # lane-dense width (multiple of 128)
    itemsize = jnp.dtype(dtype).itemsize
    sub = 16 if itemsize < 4 else 8        # sublane packing granularity

    rows = n // W                          # full 1024-wide rows (main slab)
    n_main = rows * W
    tail = n - n_main                      # < W leftover elements

    rp_flat = r_p.reshape(-1)
    rne_flat = r_ne.reshape(-1)

    main_out = None
    if rows > 0:
        def main_view(x):
            if tail:
                x = lax.slice(x, (0,), (n_main,))
            return x.reshape(rows, W)      # zero-copy reshape when tail == 0

        rp2 = main_view(rp_flat)
        rne2 = main_view(rne_flat)

        if rows <= max_tile_rows:
            if split_for_cores and rows >= 2 * sub:
                # v7x: make at least 2 row-blocks so both TensorCores get work.
                tile_rows = sub * pl.cdiv(pl.cdiv(rows, 2), sub)
            else:
                tile_rows = rows           # single full-extent block (always legal)
        else:
            tile_rows = max_tile_rows      # multiple of `sub`; last block may be partial

        grid = (pl.cdiv(rows, tile_rows),)
        spec = pl.BlockSpec((tile_rows, W), lambda i: (i, 0))

        cp_kwargs = dict(dimension_semantics=("parallel",))
        if vmem_limit_bytes is not None:
            cp_kwargs["vmem_limit_bytes"] = vmem_limit_bytes

        main_out = pl.pallas_call(
            _bpr_loss_kernel,
            out_shape=jax.ShapeDtypeStruct((rows, W), dtype),
            grid=grid,
            in_specs=[spec, spec],
            out_specs=spec,
            compiler_params=pltpu.CompilerParams(**cp_kwargs),
            cost_estimate=pl.CostEstimate(
                flops=3 * n_main,                      # sub, abs/max, add
                transcendentals=2 * n_main,            # exp + log1p
                bytes_accessed=3 * n_main * itemsize,  # 2 reads + 1 write
            ),
        )(rp2, rne2).reshape(-1)

    if tail:
        # TODO(synk): the tail could also be a masked final grid step driven by
        # an SMEM scalar, but <1024 elements of plain jnp is negligible.
        tail_out = _softplus_stable(rne_flat[n_main:] - rp_flat[n_main:])
        out = tail_out if main_out is None else jnp.concatenate([main_out, tail_out])
    else:
        out = main_out

    return out.reshape(orig_shape)


if __name__ == "__main__":
    key = jax.random.PRNGKey(0)
    k1, k2, k3, k4, k5, k6 = jax.random.split(key, 6)

    def ref(r_p, r_ne):
        return -jnp.log(jax.nn.sigmoid(r_p - r_ne))

    # Example 1: 4096 (pos, neg) score pairs -> exercises the Pallas main path
    # (4 rows x 1024 lanes, no tail, zero-copy reshape).
    r_p1 = jax.random.normal(k1, (4096,), dtype=jnp.float32)
    r_ne1 = jax.random.normal(k2, (4096,), dtype=jnp.float32)
    out1 = jax.block_until_ready(pitf_loss(r_p1, r_ne1))
    assert out1.shape == r_p1.shape and out1.dtype == r_p1.dtype
    assert jnp.allclose(out1, ref(r_p1, r_ne1), atol=1e-5, rtol=1e-5)

    # Example 2: ragged 2-D shape smaller than one lane row -> pure tail path.
    r_p2 = jax.random.normal(k3, (10, 37), dtype=jnp.float32)
    r_ne2 = jax.random.normal(k4, (10, 37), dtype=jnp.float32)
    out2 = jax.block_until_ready(pitf_loss(r_p2, r_ne2))
    assert out2.shape == r_p2.shape and out2.dtype == r_p2.dtype
    assert jnp.allclose(out2, ref(r_p2, r_ne2), atol=1e-5, rtol=1e-5)

    # Example 3: 3000 elements -> Pallas main slab (2 x 1024) + 952-element tail.
    r_p3 = jax.random.normal(k5, (3, 1000), dtype=jnp.float32)
    r_ne3 = jax.random.normal(k6, (3, 1000), dtype=jnp.float32)
    out3 = jax.block_until_ready(pitf_loss(r_p3, r_ne3))
    assert out3.shape == r_p3.shape and out3.dtype == r_p3.dtype
    assert jnp.allclose(out3, ref(r_p3, r_ne3), atol=1e-5, rtol=1e-5)

    print("KERNEL_OK")
</pallas_src>

<mosaic_0001>
module attributes {stable_mosaic.version = 11 : i64} {
  func.func @_bpr_loss_kernel(%arg0: i32, %arg1: memref<4x1024xf32, #tpu.memory_space<vmem>>, %arg2: memref<4x1024xf32, #tpu.memory_space<vmem>>, %arg3: memref<4x1024xf32, #tpu.memory_space<vmem>>) attributes {dimension_semantics = [#tpu.dimension_semantics<parallel>], iteration_bounds = array<i64: 1>, scalar_prefetch = 0 : i64, scratch_operands = 0 : i64, tpu.core_type = #tpu.core_type<tc>, window_params = [{transform_indices = @transform_0, window_bounds = array<i64: 4, 1024>}, {transform_indices = @transform_1, window_bounds = array<i64: 4, 1024>}, {transform_indices = @transform_2, window_bounds = array<i64: 4, 1024>}]} {
    %c0 = arith.constant 0 : index
    %c0_0 = arith.constant 0 : index
    %0 = vector.load %arg2[%c0, %c0_0] : memref<4x1024xf32, #tpu.memory_space<vmem>>, vector<4x1024xf32>
    %c0_1 = arith.constant 0 : index
    %c0_2 = arith.constant 0 : index
    %1 = vector.load %arg1[%c0_1, %c0_2] : memref<4x1024xf32, #tpu.memory_space<vmem>>, vector<4x1024xf32>
    %2 = arith.subf %0, %1 : vector<4x1024xf32>
    %cst = arith.constant 0.000000e+00 : f32
    %3 = vector.broadcast %cst : f32 to vector<4x1024xf32>
    %4 = arith.maximumf %2, %3 : vector<4x1024xf32>
    %5 = math.absf %2 : vector<4x1024xf32>
    %cst_3 = arith.constant 0.000000e+00 : f32
    %6 = vector.broadcast %cst_3 : f32 to vector<4x1024xf32>
    %7 = arith.subf %6, %5 : vector<4x1024xf32>
    %8 = math.exp %7 : vector<4x1024xf32>
    %9 = math.log1p %8 : vector<4x1024xf32>
    %10 = arith.addf %4, %9 : vector<4x1024xf32>
    %c0_4 = arith.constant 0 : index
    %c0_5 = arith.constant 0 : index
    %11 = vector.load %arg3[%c0_4, %c0_5] : memref<4x1024xf32, #tpu.memory_space<vmem>>, vector<4x1024xf32>
    tpu.vector_store %arg3[%c0_4, %c0_5], %10 {strides = array<i32>} : memref<4x1024xf32, #tpu.memory_space<vmem>>, vector<4x1024xf32>,
    return
  }
  func.func @transform_0(%arg0: i32) -> (i32, i32) {
    %c0_i32 = arith.constant 0 : i32
    %c0_i32_0 = arith.constant 0 : i32
    return %arg0, %c0_i32 : i32, i32
  }
  func.func @transform_1(%arg0: i32) -> (i32, i32) {
    %c0_i32 = arith.constant 0 : i32
    %c0_i32_0 = arith.constant 0 : i32
    return %arg0, %c0_i32 : i32, i32
  }
  func.func @transform_2(%arg0: i32) -> (i32, i32) {
    %c0_i32 = arith.constant 0 : i32
    %c0_i32_0 = arith.constant 0 : i32
    return %arg0, %c0_i32 : i32, i32
  }
}

</mosaic_0001>

<bundles_post_ra>
// kernel: tpu_custom_call.1
= control target key start
LH: loop header
LB: loop body
LE: loop exit
PB: predicated region body
PF: predicated region fallthrough
CT: control target
= control target key end

     0   :  { %7 = vsyncpa [#allocation3], 0  ;;  %s262_s0 = inlined_call_operand.hbm [shape: f32[4,1024], index: 0, kind: input, shape index: {}]   ;;  %s263_s1 = inlined_call_operand.hbm [shape: f32[4,1024], index: 1, kind: input, shape index: {}]   ;;  %s264_s2 = inlined_call_operand.hbm [shape: f32[4,1024], index: 2, kind: output, shape index: {}]  }
   0x1   :  { %8 = vsyncpa [#allocation6], 0 }
   0x2   :  { %9 = vsyncpa [#allocation4], 0  ;;  %s213_s9 = smov [#allocation2]   ;;  %s214_s11 = smov [#allocation5]  }
   0x3   :  { %s16_s10 = sshll.u32 %s213_s9, 4  ;;  %s26_s12 = sshll.u32 %s214_s11, 4  ;;  %s17_s10 = int_to_ptr.vmem [resolvable:$true] %s16_s10  ;;  %s27_s12 = int_to_ptr.vmem [resolvable:$true] %s26_s12 }
   0x4   :  { %s155_s13 = scalar_lea.vmem %s17_s10, 512  ;;  %p160_p1 = scmp.lt.s32.totalorder %s17_s10, %s17_s10 }
   0x5   :  { %p156_p0 = scmp.ne.s32.totalorder %s17_s10, %s155_s13  ;;  %p161_p2 = scmp.lt.s32.totalorder %s155_s13, %s155_s13 }
   0x7   :  { %p162_p3 = por %p161_p2, %p160_p1 }
   0x9   :  { %p163_p4 = pnand %p162_p3, %p156_p0 }
   0xb   :  { %166 = shalt.err (!%p163_p4)
}
   0xc   :  { %19 = dma.hbm_to_vmem [thread:$0]  %s262_s0, 512, %s17_s10, [#allocation3]  }
   0xd   :  { %s175_s16 = scalar_lea.vmem %s27_s12, 512  ;;  %p180_p6 = scmp.lt.s32.totalorder %s27_s12, %s27_s12 }
   0xe   :  { %p176_p5 = scmp.ne.s32.totalorder %s27_s12, %s175_s16  ;;  %p181_p7 = scmp.lt.s32.totalorder %s175_s16, %s175_s16 }
  0x10   :  { %p182_p8 = por %p181_p7, %p180_p6 }
  0x12   :  { %p183_p9 = pnand %p182_p8, %p176_p5 }
  0x14   :  { %186 = shalt.err (!%p183_p9)
}
  0x15   :  { %29 = dma.hbm_to_vmem [thread:$0]  %s263_s1, 512, %s27_s12, [#allocation6]  }
  0x16   :  { %207 = dma.done.wait [#allocation3], 512  }
  0x17   :  { %208 = vsyncadd [#allocation3], 4294966784 }
  0x18   :  { %209 = dma.done.wait [#allocation6], 512  }
  0x19   :  { %210 = vsyncadd [#allocation6], 4294966784  ;;  %v36_v0 = vld [vmem:[#allocation5] sm:$0xff]  ;;  %v37_v2 = vld [vmem:[#allocation5 + $0x8] sm:$0xff]  ;;  %s215_s0 = smov [#allocation7]  }
  0x1a   :  { %v40_v1 = vld [vmem:[#allocation2] sm:$0xff]  ;;  %v41_v4 = vld [vmem:[#allocation2 + $0x8] sm:$0xff]  ;;  %v38_v5 = vld [vmem:[#allocation5 + $0x10] sm:$0xff]  ;;  %s118_s1 = sshll.u32 %s215_s0, 4  ;;  %s119_s1 = int_to_ptr.vmem [resolvable:$true] %s118_s1 }
  0x1b   :  { %v237_v3 = vsub.f32 %v36_v0, %v40_v1  ;;  %v42_v6 = vld [vmem:[#allocation2 + $0x10] sm:$0xff]  ;;  %v239_v7 = vsub.f32 %v37_v2, %v41_v4  ;;  %v39_v9 = vld [vmem:[#allocation5 + $0x18] sm:$0xff]  ;;  %s187_s19 = scalar_lea.vmem %s119_s1, 512  ;;  %p192_p11 = scmp.lt.s32.totalorder %s119_s1, %s119_s1 }
  0x1c   :  { %v241_v8 = vsub.f32 %v38_v5, %v42_v6  ;;  %v43_v10 = vld [vmem:[#allocation2 + $0x18] sm:$0xff]  ;;  %p188_p10 = scmp.ne.s32.totalorder %s119_s1, %s187_s19  ;;  %p193_p12 = scmp.lt.s32.totalorder %s187_s19, %s187_s19 }
  0x1d   :  { %v52_v11 = vand.u32 2147483647, %v237_v3  ;;  %v244_v12 = vsub.f32 %v39_v9, %v43_v10  ;;  %v53_v13 = vand.u32 2147483647, %v239_v7  ;;  %v48_v45 = vmax.f32 %v237_v3, 0.0 }
  0x1e   :  { %v54_v14 = vand.u32 2147483647, %v241_v8  ;;  %v49_v51 = vmax.f32 %v239_v7, 0.0  ;;  %v50_v55 = vmax.f32 %v241_v8, 0.0  ;;  %p194_p13 = por %p193_p12, %p192_p11 }
  0x1f   :  { %v56_v15 = vsub.f32 0.0, %v52_v11  ;;  %v55_v16 = vand.u32 2147483647, %v244_v12  ;;  %v57_v17 = vsub.f32 0.0, %v53_v13  ;;  %v51_v62 = vmax.f32 %v244_v12, 0.0 }
  0x20   :  { %v58_v18 = vsub.f32 0.0, %v54_v14  ;;  %p195_p0 = pnand %p194_p13, %p188_p10 }
  0x21   :  { %v60_v19 = vmul.f32 1.442695, %v56_v15  ;;  %v59_v20 = vsub.f32 0.0, %v55_v16  ;;  %v62_v21 = vmul.f32 1.442695, %v57_v17 }
  0x22   :  { %v64_v22 = vmul.f32 1.442695, %v58_v18 }
  0x23   :  { %131 = vpow2.f32 %v60_v19  ;;  %v66_v23 = vmul.f32 1.442695, %v59_v20 }
  0x24   :  { %133 = vpow2.f32 %v62_v21 }
  0x25   :  { %135 = vpow2.f32 %v64_v22 }
  0x26   :  { %137 = vpow2.f32 %v66_v23 }
  0x30   :  { %v132_v24 = vpop.eup %131 }
  0x31   :  { %v134_v25 = vpop.eup %133  ;;  %v68_v26 = vadd.f32 1.0, %v132_v24  ;;  %v71_v32 = vmul.f32 -0.5, %v132_v24  ;;  %v74_v37 = vand.u32 2147483647, %v132_v24 }
  0x32   :  { %v136_v27 = vpop.eup %135  ;;  %v77_v28 = vadd.f32 1.0, %v134_v25  ;;  %v80_v33 = vmul.f32 -0.5, %v134_v25  ;;  %v83_v39 = vand.u32 2147483647, %v134_v25 }
  0x33   :  { %v138_v29 = vpop.eup %137  ;;  %139 = vlog2.f32 %v68_v26  ;;  %v86_v30 = vadd.f32 1.0, %v136_v27  ;;  %v89_v34 = vmul.f32 -0.5, %v136_v27  ;;  %v72_v35 = vadd.f32 1.0, %v71_v32 }
  0x34   :  { %141 = vlog2.f32 %v77_v28  ;;  %v95_v31 = vadd.f32 1.0, %v138_v29  ;;  %v98_v36 = vmul.f32 -0.5, %v138_v29  ;;  %v81_v38 = vadd.f32 1.0, %v80_v33 }
  0x35   :  { %143 = vlog2.f32 %v86_v30  ;;  %v90_v40 = vadd.f32 1.0, %v89_v34  ;;  %v92_v41 = vand.u32 2147483647, %v136_v27  ;;  %v73_v42 = vmul.f32 %v132_v24, %v72_v35 }
  0x36   :  { %145 = vlog2.f32 %v95_v31  ;;  %v99_v43 = vadd.f32 1.0, %v98_v36  ;;  %vm250_vm0 = vcmp.lt.f32.partialorder %v74_v37, 0.0004427343  ;;  %v82_v47 = vmul.f32 %v134_v25, %v81_v38 }
  0x37   :  { %v101_v48 = vand.u32 2147483647, %v138_v29  ;;  %vm84_vm1 = vcmp.lt.f32.partialorder %v83_v39, 0.0004427343  ;;  %v91_v52 = vmul.f32 %v136_v27, %v90_v40  ;;  %vm93_vm2 = vcmp.lt.f32.partialorder %v92_v41, 0.0004427343 }
  0x38   :  { %v100_v58 = vmul.f32 %v138_v29, %v99_v43 }
  0x39   :  { %vm102_vm3 = vcmp.lt.f32.partialorder %v101_v48, 0.0004427343 }
  0x40   :  { %v140_v44 = vpop.eup %139 }
  0x41   :  { %v142_v49 = vpop.eup %141  ;;  %v70_v50 = vmul.f32 0.6931472, %v140_v44 }
  0x42   :  { %v144_v53 = vpop.eup %143  ;;  %v79_v54 = vmul.f32 0.6931472, %v142_v49 }
  0x43   :  { %v76_v56 = vsel %vm250_vm0, %v73_v42, %v70_v50  ;;  %v88_v57 = vmul.f32 0.6931472, %v144_v53  ;;  %v146_v59 = vpop.eup %145 }
  0x44   :  { %v104_v60 = vadd.f32 %v76_v56, %v48_v45  ;;  %v85_v61 = vsel %vm84_vm1, %v82_v47, %v79_v54  ;;  %v97_v1 = vmul.f32 0.6931472, %v146_v59 }
  0x45   :  { %v105_v63 = vadd.f32 %v85_v61, %v49_v51  ;;  %v94_v0 = vsel %vm93_vm2, %v91_v52, %v88_v57 }
  0x46   :  { %108 = vst [vmem:[#allocation7] sm:$0xff] %v104_v60  ;;  %v106_v2 = vadd.f32 %v94_v0, %v50_v55  ;;  %v103_v3 = vsel %vm102_vm3, %v100_v58, %v97_v1 }
  0x47   :  { %109 = vst [vmem:[#allocation7 + $0x8] sm:$0xff] %v105_v63  ;;  %v107_v4 = vadd.f32 %v103_v3, %v51_v62 }
  0x48   :  { %110 = vst [vmem:[#allocation7 + $0x10] sm:$0xff] %v106_v2 }
  0x49   :  { %111 = vst [vmem:[#allocation7 + $0x18] sm:$0xff] %v107_v4 }
  0x4a   :  { %198 = shalt.err (!%p195_p0)
}
  0x4b   :  { %121 = dma.vmem_to_hbm [thread:$0]  %s119_s1, 512, %s264_s2, [#allocation4]  }
  0x4c   :  { %211 = dma.done.wait [#allocation4], 512  }
  0x4d   :  { %212 = vsyncadd [#allocation4], 4294966784 }
  0x4e   :  { %125 = vsyncpa [#allocation3], 1 }
  0x4f   :  { %126 = vsyncpa [#allocation6], 1 }
  0x50   :  { %127 = vsyncpa [#allocation4], 1 }

</bundles_post_ra>
